<compile_context>
chip_gen: v6e
topology: v6e:2x2x1
jax: 0.10.0
libtpu: 0.0.40
codegen_flags: <defaults>
</compile_context>

<pallas_src>
import functools

import jax
import jax.numpy as jnp
from jax.experimental import pallas as pl
from jax.experimental.pallas import tpu as pltpu


_LANE = 128
_VMEM_TILE_BUDGET = 24 * 1024 * 1024   # working-set budget for tile selection
_VMEM_LIMIT_BYTES = 32 * 1024 * 1024   # explicit scoped VMEM limit (safe on v5e/v6e/v7x)


def _round_up(x, m):
    return -(-x // m) * m


# ---------------------------------------------------------------------------
# Fused tiled matmul:  out = act((A @ W_folded) + shift [+ residual])
# ---------------------------------------------------------------------------
def _tile_bytes(tm, tk, tn, multi_k, has_res, has_mask):
    # double-buffered bf16 operands/outputs (+ optional f32 accumulator scratch)
    b = 2 * (tm * tk * 2 + tk * tn * 2 + tm * tn * 2 + tn * 4)
    if has_res:
        b += 2 * tm * tn * 2
    if has_mask:
        b += 2 * tn * 4
    if multi_k:
        b += tm * tn * 4
    return b


def _select_tiles(M, K, C, has_res, has_mask):
    # TM: full M, or two parallel M tiles when M is large (feeds v7x's 2nd core).
    TM = M // 2 if (M >= 256 and M % 16 == 0) else M
    # TN: lane-dense (C is a multiple of 128); two parallel N tiles when possible.
    TN = C // 2 if (C >= 256 and (C // 2) % _LANE == 0) else C
    # TK: prefer the full contraction (single K step -> no accumulator round-trip).
    TK = K
    if _tile_bytes(TM, TK, TN, False, has_res, has_mask) <= _VMEM_TILE_BUDGET:
        return TM, TN, TK, False
    for cand in (1024, 512, 384, 256, 128):      # fallback: split K (128-multiples)
        if K % cand == 0 and _tile_bytes(TM, cand, TN, True, has_res, has_mask) <= _VMEM_TILE_BUDGET:
            return TM, TN, cand, True
    while (TM > 8 and TM % 16 == 0
           and _tile_bytes(TM, TK, TN, False, has_res, has_mask) > _VMEM_TILE_BUDGET):
        TM //= 2                                  # last resort: shrink M tiles
    return TM, TN, TK, False


def _fused_matmul_kernel(*refs, relu_mode, has_res, multi_k):
    it = iter(refs)
    a_ref = next(it)
    w_ref = next(it)
    b_ref = next(it)
    r_ref = next(it) if has_res else None
    m_ref = next(it) if relu_mode == "mask" else None
    o_ref = next(it)
    acc_ref = next(it) if multi_k else None

    def finalize(acc):
        y = acc + b_ref[...]
        if has_res:
            y = y + r_ref[...].astype(jnp.float32)
        if relu_mode == "all":
            y = jnp.maximum(y, 0.0)
        elif relu_mode == "mask":
            # mask==1 -> relu(y); mask==0 -> y  (no select, pure VPU arithmetic)
            y = y + m_ref[...] * (jnp.maximum(y, 0.0) - y)
        o_ref[...] = y.astype(o_ref.dtype)

    if multi_k:
        k = pl.program_id(2)

        @pl.when(k == 0)
        def _():
            acc_ref[...] = jnp.zeros_like(acc_ref)

        acc_ref[...] += jnp.dot(a_ref[...], w_ref[...],
                                preferred_element_type=jnp.float32)

        @pl.when(k == pl.num_programs(2) - 1)
        def _():
            finalize(acc_ref[...])
    else:
        finalize(jnp.dot(a_ref[...], w_ref[...],
                         preferred_element_type=jnp.float32))


def fused_matmul(a, w, shift, residual=None, relu=True, relu_mask=None,
                 out_dtype=jnp.bfloat16):
    """(M,K) @ (K,C) with BN scale pre-folded into w; fused shift/residual/ReLU."""
    M, K = a.shape
    K2, C = w.shape
    assert K == K2 and C % _LANE == 0, (a.shape, w.shape)
    a = a.astype(jnp.bfloat16)
    w = w.astype(jnp.bfloat16)
    shift = shift.reshape(1, C).astype(jnp.float32)
    has_res = residual is not None
    relu_mode = "mask" if relu_mask is not None else ("all" if relu else "none")

    TM, TN, TK, multi_k = _select_tiles(M, K, C, has_res, relu_mode == "mask")

    if multi_k:
        grid = (M // TM, C // TN, K // TK)
        a_spec = pl.BlockSpec((TM, TK), lambda i, j, k: (i, k))
        w_spec = pl.BlockSpec((TK, TN), lambda i, j, k: (k, j))
        col_spec = pl.BlockSpec((1, TN), lambda i, j, k: (0, j))
        mn_spec = pl.BlockSpec((TM, TN), lambda i, j, k: (i, j))
        scratch = [pltpu.VMEM((TM, TN), jnp.float32)]
        dims = ("parallel", "parallel", "arbitrary")
    else:
        grid = (M // TM, C // TN)
        a_spec = pl.BlockSpec((TM, TK), lambda i, j: (i, 0))
        w_spec = pl.BlockSpec((TK, TN), lambda i, j: (0, j))
        col_spec = pl.BlockSpec((1, TN), lambda i, j: (0, j))
        mn_spec = pl.BlockSpec((TM, TN), lambda i, j: (i, j))
        scratch = []
        dims = ("parallel", "parallel")

    in_specs = [a_spec, w_spec, col_spec]
    args = [a, w, shift]
    if has_res:
        in_specs.append(mn_spec)
        args.append(residual.reshape(M, C).astype(jnp.bfloat16))
    if relu_mode == "mask":
        in_specs.append(col_spec)
        args.append(relu_mask.reshape(1, C).astype(jnp.float32))

    return pl.pallas_call(
        functools.partial(_fused_matmul_kernel, relu_mode=relu_mode,
                          has_res=has_res, multi_k=multi_k),
        out_shape=jax.ShapeDtypeStruct((M, C), out_dtype),
        grid_spec=pltpu.PrefetchScalarGridSpec(
            num_scalar_prefetch=0,
            grid=grid,
            in_specs=in_specs,
            out_specs=mn_spec,
            scratch_shapes=scratch,
        ),
        compiler_params=pltpu.CompilerParams(
            dimension_semantics=dims,
            vmem_limit_bytes=_VMEM_LIMIT_BYTES),
    )(*args)


# ---------------------------------------------------------------------------
# Fused global-avg-pool + fc (lane-dense: C=512 on lanes, fc out padded to 128)
# ---------------------------------------------------------------------------
def _pool_fc_kernel(x_ref, w_ref, b_ref, z_ref, o_ref, *, inv_hw):
    z = jnp.sum(x_ref[...].astype(jnp.float32), axis=1) * inv_hw        # (N, C)
    z_ref[...] = z
    o_ref[...] = (jnp.dot(z.astype(jnp.bfloat16), w_ref[...],
                          preferred_element_type=jnp.float32) + b_ref[...])


def pool_fc(x_nhwc, fc_w, fc_b):
    N, H, W, C = x_nhwc.shape
    HW = H * W
    x = x_nhwc.reshape(N, HW, C)
    _, OP = fc_w.shape
    z, logits = pl.pallas_call(
        functools.partial(_pool_fc_kernel, inv_hw=1.0 / HW),
        out_shape=(jax.ShapeDtypeStruct((N, C), jnp.float32),
                   jax.ShapeDtypeStruct((N, OP), jnp.float32)),
        compiler_params=pltpu.CompilerParams(vmem_limit_bytes=_VMEM_LIMIT_BYTES),
    )(x, fc_w.astype(jnp.bfloat16), fc_b.astype(jnp.float32))
    return z, logits


# ---------------------------------------------------------------------------
# Glue: im2col, conv wrapper, ResNet-18 BasicBlock
# ---------------------------------------------------------------------------
def im2col(x, k, stride, pad):
    # x: (N, H, W, C) -> patches (N*Ho*Wo, k*k*C), patch order (kh, kw, Cin).
    N, H, W, C = x.shape
    if pad:
        x = jnp.pad(x, ((0, 0), (pad, pad), (pad, pad), (0, 0)))
    Ho = (H + 2 * pad - k) // stride + 1
    Wo = (W + 2 * pad - k) // stride + 1
    cols = []
    for i in range(k):
        for j in range(k):
            cols.append(x[:, i:i + stride * Ho:stride, j:j + stride * Wo:stride, :])
    patches = jnp.concatenate(cols, axis=-1)
    return patches.reshape(N * Ho * Wo, k * k * C), (N, Ho, Wo)


def conv_bn(x, p, relu=True, residual=None, relu_mask=None):
    patches, (N, Ho, Wo) = im2col(x, p["k"], p["stride"], p["pad"])
    y = fused_matmul(patches, p["w"], p["shift"], residual=residual,
                     relu=relu, relu_mask=relu_mask)
    return y.reshape(N, Ho, Wo, y.shape[-1])


def basic_block(x, bp):
    if "fused" in bp:                      # downsampling block: conv1 + 1x1 down fused
        f = bp["fused"]
        y = conv_bn(x, f, relu_mask=f["relu_mask"])
        cp = f["cout_half"]
        h, identity = y[..., :cp], y[..., cp:]
    else:
        h = conv_bn(x, bp["conv1"], relu=True)
        identity = x
    N, H, W, _ = h.shape
    # conv2 with the residual add + ReLU fused into the matmul epilogue
    return conv_bn(h, bp["conv2"], relu=True,
                   residual=identity.reshape(N * H * W, identity.shape[-1]))


# ---------------------------------------------------------------------------
# Parameter preparation: fold BN scale into weights (f32), pad channels to 128
# lanes, build the fused conv1+downsample weights, cast to bf16 once.
# ---------------------------------------------------------------------------
def _fold_conv(p, cin_pad=None):
    w = p["w"].astype(jnp.float32) * p["scale"].astype(jnp.float32)     # fold BN scale
    kh, kw, cin, cout = w.shape
    cin_p = cin if cin_pad is None else cin_pad
    cout_p = _round_up(cout, _LANE)
    w = jnp.pad(w, ((0, 0), (0, 0), (0, cin_p - cin), (0, cout_p - cout)))
    shift = jnp.pad(p["shift"].astype(jnp.float32), (0, cout_p - cout)).reshape(1, cout_p)
    return dict(w=w.reshape(kh * kw * cin_p, cout_p).astype(jnp.bfloat16),
                shift=shift, k=p["k"], stride=p["stride"], pad=p["pad"])


def _fold_fused_down(conv1_p, down_p, cin_pad):
    # The 1x1/s downsample reads exactly the centre tap of conv1's 3x3/s im2col patch.
    c1 = _fold_conv(conv1_p, cin_pad=cin_pad)
    dn = _fold_conv(down_p, cin_pad=cin_pad)
    kk_cin, cp = c1["w"].shape
    dn_w = jnp.zeros((kk_cin, cp), jnp.bfloat16)
    dn_w = dn_w.at[4 * cin_pad:5 * cin_pad, :].set(dn["w"])   # centre tap (kh=1, kw=1)
    return dict(w=jnp.concatenate([c1["w"], dn_w], axis=1),
                shift=jnp.concatenate([c1["shift"], dn["shift"]], axis=1),
                relu_mask=jnp.concatenate([jnp.ones((1, cp), jnp.float32),
                                           jnp.zeros((1, cp), jnp.float32)], axis=1),
                k=3, stride=conv1_p["stride"], pad=1, cout_half=cp)


def prepare_params(params):
    prep = {"conv1": _fold_conv(params["conv1"])}
    prev_c = prep["conv1"]["w"].shape[1]
    layers = []
    for blocks in params["layers"]:
        pblocks = []
        for blk in blocks:
            pb = {}
            if "down" in blk:
                pb["fused"] = _fold_fused_down(blk["conv1"], blk["down"], cin_pad=prev_c)
                cmid = pb["fused"]["cout_half"]
            else:
                pb["conv1"] = _fold_conv(blk["conv1"], cin_pad=prev_c)
                cmid = pb["conv1"]["w"].shape[1]
            pb["conv2"] = _fold_conv(blk["conv2"], cin_pad=cmid)
            prev_c = pb["conv2"]["w"].shape[1]
            pblocks.append(pb)
        layers.append(pblocks)
    prep["layers"] = layers
    d, o = params["fc_w"].shape
    o_pad = _round_up(max(o, 1), _LANE)
    prep["fc_w"] = jnp.zeros((d, o_pad), jnp.bfloat16).at[:, :o].set(
        params["fc_w"].astype(jnp.bfloat16))
    prep["fc_b"] = jnp.zeros((1, o_pad), jnp.float32).at[:, :o].set(
        params["fc_b"].astype(jnp.float32))
    return prep


# ---------------------------------------------------------------------------
# Deterministic synthetic parameters (eval-mode BN expressed as scale/shift)
# ---------------------------------------------------------------------------
def _conv_bn_params(key, cin, cout, k, stride, pad):
    k_w, k_g, k_b, k_m, k_v = jax.random.split(key, 5)
    fan_in = cin * k * k
    w = jax.random.normal(k_w, (k, k, cin, cout), jnp.float32) / jnp.sqrt(fan_in)
    gamma = 1.0 + 0.1 * jax.random.normal(k_g, (cout,), jnp.float32)
    beta = 0.1 * jax.random.normal(k_b, (cout,), jnp.float32)
    mean = 0.1 * jax.random.normal(k_m, (cout,), jnp.float32)
    var = 1.0 + 0.1 * jax.random.uniform(k_v, (cout,), jnp.float32)
    scale = gamma / jnp.sqrt(var + 1e-5)
    shift = beta - mean * scale
    return dict(w=w, scale=scale, shift=shift, k=k, stride=stride, pad=pad)


def init_annealing_backbone_params(key, num_classes=10):
    keys = iter(jax.random.split(key, 64))
    params = {}
    # args.c_resolution < 100 branch: conv1 = 3x3/s1/p1, maxpool = Identity
    params["conv1"] = _conv_bn_params(next(keys), 3, 64, 3, 1, 1)
    layers = []
    cin = 64
    for cout, stride in [(64, 1), (128, 2), (256, 2), (512, 2)]:
        blocks = []
        for b in range(2):
            s = stride if b == 0 else 1
            blk = {
                "conv1": _conv_bn_params(next(keys), cin if b == 0 else cout, cout, 3, s, 1),
                "conv2": _conv_bn_params(next(keys), cout, cout, 3, 1, 1),
            }
            if b == 0 and (s != 1 or cin != cout):
                blk["down"] = _conv_bn_params(next(keys), cin, cout, 1, s, 0)
            blocks.append(blk)
        cin = cout
        layers.append(blocks)
    params["layers"] = layers
    k_fw, k_fb = jax.random.split(next(keys), 2)
    params["fc_w"] = jax.random.normal(k_fw, (512, num_classes), jnp.float32) / jnp.sqrt(512.0)
    params["fc_b"] = 0.1 * jax.random.normal(k_fb, (num_classes,), jnp.float32)
    return params


# ---------------------------------------------------------------------------
# Forward pass == AnnealingBackbone.forward(x, return_z)
# ---------------------------------------------------------------------------
def annealing_backbone_forward(prep, x_nchw, class_range, return_z=False):
    # PyTorch hands us NCHW -> NHWC (lane-dense channels) in bf16 for the MXU.
    x = jnp.transpose(x_nchw, (0, 2, 3, 1)).astype(jnp.bfloat16)
    x = conv_bn(x, prep["conv1"], relu=True)          # conv1 + bn1 + relu
    # maxpool = nn.Identity()
    for blocks in prep["layers"]:                     # layer1..layer4
        for blk in blocks:
            x = basic_block(x, blk)
    # adaptive avg pool (1,1) + fc fused; z = self.net(x), logits = fc(z)
    z, logits_full = pool_fc(x, prep["fc_w"], prep["fc_b"])
    logits = logits_full[:, :class_range]
    return (logits, z) if return_z else logits


if __name__ == "__main__":
    key = jax.random.PRNGKey(0)
    k_params, k_x = jax.random.split(key)
    num_classes = 10
    class_range = 7  # slice [:, :class_range] as in the module

    params = init_annealing_backbone_params(k_params, num_classes=num_classes)
    prepared = prepare_params(params)
    x = jax.random.normal(k_x, (2, 3, 16, 16), jnp.float32)  # NCHW, like PyTorch

    logits, z = annealing_backbone_forward(prepared, x, class_range, return_z=True)
    jax.block_until_ready((logits, z))

    assert logits.shape == (2, class_range), logits.shape
    assert z.shape == (2, 512), z.shape
    assert bool(jnp.all(jnp.isfinite(logits))) and bool(jnp.all(jnp.isfinite(z)))
    print("KERNEL_OK")
</pallas_src>

<mosaic_0001>
module attributes {stable_mosaic.version = 11 : i64} {
  func.func @_fused_matmul_kernel(%arg0: i32, %arg1: i32, %arg2: memref<256x27xbf16, #tpu.memory_space<vmem>>, %arg3: memref<27x128xbf16, #tpu.memory_space<vmem>>, %arg4: memref<1x128xf32, #tpu.memory_space<vmem>>, %arg5: memref<256x128xbf16, #tpu.memory_space<vmem>>) attributes {dimension_semantics = [#tpu.dimension_semantics<parallel>, #tpu.dimension_semantics<parallel>], iteration_bounds = array<i64: 2, 1>, scalar_prefetch = 0 : i64, scratch_operands = 0 : i64, tpu.core_type = #tpu.core_type<tc>, window_params = [{transform_indices = @transform_0, window_bounds = array<i64: 256, 27>}, {transform_indices = @transform_1, window_bounds = array<i64: 27, 128>}, {transform_indices = @transform_2, window_bounds = array<i64: 1, 128>}, {transform_indices = @transform_3, window_bounds = array<i64: 256, 128>}]} {
    %c0 = arith.constant 0 : index
    %c0_0 = arith.constant 0 : index
    %0 = vector.load %arg2[%c0, %c0_0] : memref<256x27xbf16, #tpu.memory_space<vmem>>, vector<256x27xbf16>
    %c0_1 = arith.constant 0 : index
    %c0_2 = arith.constant 0 : index
    %1 = vector.load %arg3[%c0_1, %c0_2] : memref<27x128xbf16, #tpu.memory_space<vmem>>, vector<27x128xbf16>
    %cst = arith.constant dense<0.000000e+00> : vector<256x128xf32>
    %2 = tpu.matmul %0, %1, %cst {dimension_numbers = #tpu.dot_dimension_numbers<[1], [0], [0], [1], [0, 0, 1, 1], [], []>} : vector<256x27xbf16>, vector<27x128xbf16>, vector<256x128xf32> -> vector<256x128xf32>
    %c0_3 = arith.constant 0 : index
    %c0_4 = arith.constant 0 : index
    %3 = vector.load %arg4[%c0_3, %c0_4] : memref<1x128xf32, #tpu.memory_space<vmem>>, vector<1x128xf32>
    %4 = vector.broadcast %3 : vector<1x128xf32> to vector<256x128xf32>
    %5 = arith.addf %2, %4 : vector<256x128xf32>
    %cst_5 = arith.constant 0.000000e+00 : f32
    %6 = vector.broadcast %cst_5 : f32 to vector<256x128xf32>
    %7 = arith.maximumf %5, %6 : vector<256x128xf32>
    %8 = arith.truncf %7 : vector<256x128xf32> to vector<256x128xbf16>
    %c0_6 = arith.constant 0 : index
    %c0_7 = arith.constant 0 : index
    %9 = vector.load %arg5[%c0_6, %c0_7] : memref<256x128xbf16, #tpu.memory_space<vmem>>, vector<256x128xbf16>
    tpu.vector_store %arg5[%c0_6, %c0_7], %8 {strides = array<i32>} : memref<256x128xbf16, #tpu.memory_space<vmem>>, vector<256x128xbf16>,
    return
  }
  func.func @transform_0(%arg0: i32, %arg1: i32) -> (i32, i32) {
    %c0_i32 = arith.constant 0 : i32
    %c0_i32_0 = arith.constant 0 : i32
    return %arg0, %c0_i32 : i32, i32
  }
  func.func @transform_1(%arg0: i32, %arg1: i32) -> (i32, i32) {
    %c0_i32 = arith.constant 0 : i32
    %c0_i32_0 = arith.constant 0 : i32
    return %c0_i32, %arg1 : i32, i32
  }
  func.func @transform_2(%arg0: i32, %arg1: i32) -> (i32, i32) {
    %c0_i32 = arith.constant 0 : i32
    %c0_i32_0 = arith.constant 0 : i32
    return %c0_i32, %arg1 : i32, i32
  }
  func.func @transform_3(%arg0: i32, %arg1: i32) -> (i32, i32) {
    %c0_i32 = arith.constant 0 : i32
    return %arg0, %arg1 : i32, i32
  }
}

</mosaic_0001>

<bundles_post_ra>
// kernel: tpu_custom_call.1
= control target key start
LH: loop header
LB: loop body
LE: loop exit
PB: predicated region body
PF: predicated region fallthrough
CT: control target
= control target key end

     0   :  { %8 = vsyncpa [#allocation3], 0  ;;  %s1534_s0 = inlined_call_operand.vmem [shape: bf16[512,27], index: 0, kind: input, shape index: {}]   ;;  %s1535_s1 = inlined_call_operand.vmem [shape: bf16[27,128], index: 1, kind: input, shape index: {}]   ;;  %s1536_s2 = inlined_call_operand.vmem [shape: f32[1,128], index: 2, kind: input, shape index: {}]   ;;  %s1537_s3 = inlined_call_operand.hbm [shape: bf16[512,128], index: 3, kind: output, shape index: {}]  }
   0x1   :  { %10 = vsyncpa [#allocation3 + $0x1], 0  ;;  %s1321_s12 = smov 0   ;;  %s1323_s13 = smov 0  }
   0x2   :  { %s1325_s14 = smov 0   ;;  %s1327_s15 = smov 0  }
   0x3   :  { %s1329_s16 = smov 0   ;;  %s1331_s17 = smov 0  }
   0x4 LB: > { %s875_s18 = sadd.s32 4294967295, %s1295_s17   ;;  %s876_s19 = sadd.s32 4294967294, %s1295_s17   ;;  %s1295_s17 = sphi %s1331_s17, %s16_s17   ;;  %s1291_s16 = sphi %s1329_s16, %s1544_s16   ;;  %s1287_s15 = sphi %s1327_s15, %s1543_s15   ;;  %s1283_s14 = sphi %s1325_s14, %s1542_s14   ;;  %s1279_s13 = sphi %s1323_s13, %s1541_s13   ;;  %s1275_s12 = sphi %s1321_s12, %s1540_s12  }
   0x5   : > { %s28_s20 = sadd.s32 1, %s1291_s16  ;;  %s115_s21 = sadd.s32 1, %s1283_s14 }
   0x6   : > { %p30_p0 = scmp.ge.s32.totalorder %s28_s20, 2  ;;  %p125_p1 = scmp.ne.s32.totalorder %s1283_s14, %s1279_s13 }
   0x7   : > { %p126_p2 = scmp.eq.s32.totalorder %s875_s18, 1  ;;  %p131_p3 = scmp.ne.s32.totalorder %s1279_s13, %s1275_s12 }
   0x8   : > { %s1546_s20 = smov (%p30_p0, %s28_s20), 0  ;;  %p132_p5 = scmp.eq.s32.totalorder %s876_s19, 1 }
   0x9   : > { %p1361_p4 = por %p126_p2, %p125_p1  ;;  %s110_s23 = ssub.s32 %s1291_s16, %s1546_s20 }
   0xa   : > { %p881_p6 = scmp.ge.s32.totalorder %s1295_s17, 1  ;;  %p113_p7 = scmp.eq.s32.totalorder %s110_s23, 0 }
   0xb   : > { %p1368_p8 = por %p132_p5, %p131_p3  ;;  %p172_p9 = scmp.lt.s32.totalorder %s1295_s17, 3 }
   0xc   : > { %s1374_s25 = scalar_select %p113_p7, %s1283_s14, %s115_s21  }
   0xd   : > { %p173_p10 = pnand %p881_p6, %p172_p9 }
   0xe   : > { %s883_s28 = sshll.u32 (!%p173_p10), %s1287_s15, 5  ;;  %s200_s10 = sand.u32 (!%p173_p10), 1, %s1279_s13  }
   0xf   : > { %176 = sbr.rel (%p173_p10) target bundleno = 276 (0x114), region = 32  ;;  %p204_p11 = scmp.lt.s32.totalorder (!%p173_p10), %s883_s28, 63 }
  0x10   : > { %s882_s11 = sshll.u32 (!%p173_p10), %s200_s10, 7  ;;  %s989_s19 = sshll.u32 (!%p173_p10), %s1287_s15, 11 }
  0x11   : > { %s1438_s18 = scalar_lea.vmem (!%p173_p10), [#allocation2], %s882_s11  ;;  %s1479_s27 = scalar_lea.hbm (!%p173_p10), %s1537_s3, %s989_s19 }
  0x12   : > { %s776_s21 = sshll.u32 (!%p173_p10), %s1438_s18, 4  ;;  %s1489_s15 = scalar_lea.sflag (!%p173_p10), [#allocation3], %s200_s10  ;;  %s1481_s21 = int_to_ptr.vmem [resolvable:$true] %s776_s21 }
  0x13   : > { %s1298_s29 = smov (!%p173_p10), [#allocation2]  }
  0x14   : > { %v1201_v0 = vld [vmem:[%s1535_s1 + $0x8] sm:$0x3f]   ;;  %vm401_vm0 = vcmask 1044480   ;;  %vm402_vm1 = vcmask 1045504   ;;  %v1297_v1 = vmov 65535   ;;  %v1202_v5 = vld [vmem:[%s1535_s1] sm:$0xff]  }
  0x15   : > { %v403_v2 = vsel %vm401_vm0, 4294967295, %v1297_v1  ;;  %s1548_s28 = smov (!%p204_p11, %s883_s28), 63  ;;  %vm352_vm2 = vcmask 220160   ;;  %v1423_v22 = vld [vmem:[%s1536_s2] ss:$0 sm:$0xff]  ;;  %s1223_s30 = sshll.u32 %s1298_s29, 4  ;;  %s1224_s30 = int_to_ptr.vmem [resolvable:$false] %s1223_s30 }
  0x16   : > { %v404_v3 = vsel %vm402_vm1, %v403_v2, 0  ;;  %s884_s4 = sshll.u32 %s1548_s28, 2  ;;  %s1219_s28 = scalar_lea.vmem %s1481_s21, 2048 }
  0x17   : > { %v406_v4 = vand.u32 %v1201_v0, %v404_v3  ;;  %s1386_s7 = scalar_lea.vmem %s1534_s0, %s884_s4  ;;  %p1220_p12 = scmp.ne.s32.totalorder %s1481_s21, %s1219_s28 }
  0x18   : > { %v1203_v6 = vld [vmem:[%s1386_s7] sm:$0xff]   ;;  %v1205_v8 = vld [vmem:[%s1386_s7 + $0x8] sm:$0xff]   ;;  %v1207_v10 = vld [vmem:[%s1386_s7 + $0x10] sm:$0xff]   ;;  %s1225_s4 = scalar_lea.vmem %s1224_s30, 4096  ;;  %p1226_p1 = scmp.lt.s32.totalorder %s1481_s21, %s1224_s30 }
  0x19   : > { %1103 = vmatprep.subr.bf16.mxu0 %v406_v4  ;;  %1139 = vmatprep.subr.bf16.mxu1 %v406_v4  ;;  %v1204_v7 = vld [vmem:[%s1386_s7 + $0x40] sm:$0xff]   ;;  %v1206_v9 = vld [vmem:[%s1386_s7 + $0x48] sm:$0xff]   ;;  %v1208_v11 = vld [vmem:[%s1386_s7 + $0x50] sm:$0xff]   ;;  %p1221_p13 = pnand %p1220_p12, %p1361_p4  ;;  %p1227_p2 = scmp.lt.s32.totalorder %s1225_s4, %s1219_s28 }
  0x1a   : > { %1104 = vmatpush3.bf16.msra.mxu0 %v406_v4  ;;  %1141 = vmatpush3.bf16.msra.mxu1 %v406_v4  ;;  %v1209_v12 = vld [vmem:[%s1386_s7 + $0x18] sm:$0xff]   ;;  %v1211_v14 = vld [vmem:[%s1386_s7 + $0x20] sm:$0xff]   ;;  %v1213_v16 = vld [vmem:[%s1386_s7 + $0x28] sm:$0xff]  }
  0x1b   : > { %1105 = vmatprep.subr.bf16.mxu0 %v1202_v5  ;;  %1140 = vmatprep.subr.bf16.mxu1 %v1202_v5  ;;  %v1210_v13 = vld [vmem:[%s1386_s7 + $0x58] sm:$0xff]   ;;  %v1212_v15 = vld [vmem:[%s1386_s7 + $0x60] sm:$0xff]   ;;  %v1214_v17 = vld [vmem:[%s1386_s7 + $0x68] sm:$0xff]   ;;  %p1222_p0 = pneg %p1221_p13  ;;  %p1228_p3 = por %p1227_p2, %p1226_p1 }
  0x1c   : > { %1107 = vmatprep.mubr.msk.bf16.mxu0 %vm352_vm2, %v1203_v6  ;;  %1123 = vmatprep.mubr.msk.bf16.mxu1 %vm352_vm2, %v1204_v7  ;;  %v1215_v18 = vld [vmem:[%s1386_s7 + $0x30] sm:$0xff]   ;;  %v1217_v20 = vld [vmem:[%s1386_s7 + $0x38] sm:$0xff]  }
  0x1d   : > { %v1216_v19 = vld [vmem:[%s1386_s7 + $0x70] sm:$0xff]   ;;  %v1218_v21 = vld [vmem:[%s1386_s7 + $0x78] sm:$0xff]   ;;  %p1229_p5 = pnand %p1228_p3, %p1222_p0 }
  0x1e   : > { %1106 = vmatpush3.bf16.msra.mxu0 %v1202_v5  ;;  %1142 = vmatpush3.bf16.msra.mxu1 %v1202_v5 }
  0x21   : > { %1108 = vmatmul.mubr.msk.bf16.vlgmr.msra.gmra.mxu0 %vm352_vm2, %v1205_v8  ;;  %1124 = vmatmul.mubr.msk.bf16.vlgmr.msra.gmra.mxu1 %vm352_vm2, %v1206_v9 }
  0x22   : > { %1111 = vmatprep.mubr.msk.bf16.mxu0 %vm352_vm2, %v1207_v10  ;;  %1127 = vmatprep.mubr.msk.bf16.mxu1 %vm352_vm2, %v1208_v11 }
  0x29   : > { %1112 = vmatmul.mubr.msk.bf16.gmra.mxu0 %vm352_vm2, %v1209_v12  ;;  %1128 = vmatmul.mubr.msk.bf16.gmra.mxu1 %vm352_vm2, %v1210_v13 }
  0x2a   : > { %1115 = vmatprep.mubr.msk.bf16.mxu0 %vm352_vm2, %v1211_v14  ;;  %1131 = vmatprep.mubr.msk.bf16.mxu1 %vm352_vm2, %v1212_v15 }
  0x31   : > { %1116 = vmatmul.mubr.msk.bf16.gmra.mxu0 %vm352_vm2, %v1213_v16  ;;  %1132 = vmatmul.mubr.msk.bf16.gmra.mxu1 %vm352_vm2, %v1214_v17 }
  0x32   : > { %1119 = vmatprep.mubr.msk.bf16.mxu0 %vm352_vm2, %v1215_v18  ;;  %1135 = vmatprep.mubr.msk.bf16.mxu1 %vm352_vm2, %v1216_v19 }
  0x39   : > { %1120 = vmatmul.mubr.msk.bf16.gmra.mxu0 %vm352_vm2, %v1217_v20  ;;  %1136 = vmatmul.mubr.msk.bf16.gmra.mxu1 %vm352_vm2, %v1218_v21 }
  0xe1   : > { %v1109_v23 = vpop.f32.mrf.mxu0  ;;  %v1125_v24 = vpop.f32.mrf.mxu1 }
  0xe2   : > { %v451_v25 = vadd.f32 %v1109_v23, %v1423_v22  ;;  %v515_v26 = vadd.f32 %v1125_v24, %v1423_v22 }
  0xe3   : > { %v442_v27 = vpop.f32.mrf.mxu0  ;;  %v506_v28 = vpop.f32.mrf.mxu1 }
  0xe4   : > { %v443_v29 = vadd.f32 %v1423_v22, %v442_v27  ;;  %v507_v30 = vadd.f32 %v1423_v22, %v506_v28  ;;  %v571_v35 = vmax.f32 %v451_v25, 0.0  ;;  %v587_v36 = vmax.f32 %v515_v26, 0.0 }
  0xe5   : > { %v1110_v31 = vpop.f32.mrf.mxu0  ;;  %v1126_v32 = vpop.f32.mrf.mxu1 }
  0xe6   : > { %v454_v33 = vadd.f32 %v1110_v31, %v1423_v22  ;;  %v518_v34 = vadd.f32 %v1126_v32, %v1423_v22  ;;  %v569_v43 = vmax.f32 %v443_v29, 0.0  ;;  %v585_v44 = vmax.f32 %v507_v30, 0.0 }
  0xe7   : > { %v445_v37 = vpop.f32.mrf.mxu0  ;;  %v509_v38 = vpop.f32.mrf.mxu1 }
  0xe8   : > { %v572_v39 = vmax.f32 %v454_v33, 0.0  ;;  %v588_v40 = vmax.f32 %v518_v34, 0.0  ;;  %v446_v41 = vadd.f32 %v1423_v22, %v445_v37  ;;  %v510_v42 = vadd.f32 %v1423_v22, %v509_v38 }
  0xe9   : > { %v1113_v45 = vpop.f32.mrf.mxu0  ;;  %v1129_v46 = vpop.f32.mrf.mxu1 }
  0xea   : > { %v998_v47 = vpack.c.bf16 %v572_v39, %v571_v35  ;;  %v1038_v48 = vpack.c.bf16 %v588_v40, %v587_v36  ;;  %v570_v49 = vmax.f32 %v446_v41, 0.0  ;;  %v586_v50 = vmax.f32 %v510_v42, 0.0 }
  0xeb   : > { %v467_v51 = vadd.f32 %v1113_v45, %v1423_v22  ;;  %v531_v52 = vadd.f32 %v1129_v46, %v1423_v22  ;;  %v458_v53 = vpop.f32.mrf.mxu0  ;;  %v522_v54 = vpop.f32.mrf.mxu1 }
  0xec   : > { %1070 = vst [vmem:[%s1438_s18 + $0x8] sm:$0xff] %v998_v47   ;;  %1078 = vst [vmem:[%s1438_s18 + $0x48] sm:$0xff] %v1038_v48   ;;  %v993_v55 = vpack.c.bf16 %v570_v49, %v569_v43  ;;  %v1033_v56 = vpack.c.bf16 %v586_v50, %v585_v44  ;;  %v459_v57 = vadd.f32 %v1423_v22, %v458_v53 }
  0xed   : > { %v523_v58 = vadd.f32 %v1423_v22, %v522_v54  ;;  %v1114_v59 = vpop.f32.mrf.mxu0  ;;  %v1130_v60 = vpop.f32.mrf.mxu1  ;;  %v575_v63 = vmax.f32 %v467_v51, 0.0  ;;  %v591_v0 = vmax.f32 %v531_v52, 0.0 }
  0xee   : > { %994 = vst [vmem:[%s1438_s18] sm:$0xff] %v993_v55   ;;  %1077 = vst [vmem:[%s1438_s18 + $0x40] sm:$0xff] %v1033_v56   ;;  %v470_v61 = vadd.f32 %v1114_v59, %v1423_v22  ;;  %v534_v62 = vadd.f32 %v1130_v60, %v1423_v22  ;;  %v573_v7 = vmax.f32 %v459_v57, 0.0 }
  0xef   : > { %v461_v1 = vpop.f32.mrf.mxu0  ;;  %v525_v2 = vpop.f32.mrf.mxu1  ;;  %v589_v8 = vmax.f32 %v523_v58, 0.0 }
  0xf0   : > { %v576_v3 = vmax.f32 %v470_v61, 0.0  ;;  %v592_v4 = vmax.f32 %v534_v62, 0.0  ;;  %v462_v5 = vadd.f32 %v1423_v22, %v461_v1  ;;  %v526_v6 = vadd.f32 %v1423_v22, %v525_v2 }
  0xf1   : > { %v1117_v9 = vpop.f32.mrf.mxu0  ;;  %v1133_v10 = vpop.f32.mrf.mxu1 }
  0xf2   : > { %v1008_v11 = vpack.c.bf16 %v576_v3, %v575_v63  ;;  %v1048_v12 = vpack.c.bf16 %v592_v4, %v591_v0  ;;  %v574_v13 = vmax.f32 %v462_v5, 0.0  ;;  %v590_v14 = vmax.f32 %v526_v6, 0.0 }
  0xf3   : > { %v483_v15 = vadd.f32 %v1117_v9, %v1423_v22  ;;  %v547_v16 = vadd.f32 %v1133_v10, %v1423_v22  ;;  %v474_v17 = vpop.f32.mrf.mxu0  ;;  %v538_v18 = vpop.f32.mrf.mxu1 }
  0xf4   : > { %1072 = vst [vmem:[%s1438_s18 + $0x18] sm:$0xff] %v1008_v11   ;;  %1080 = vst [vmem:[%s1438_s18 + $0x58] sm:$0xff] %v1048_v12   ;;  %v1003_v19 = vpack.c.bf16 %v574_v13, %v573_v7  ;;  %v1043_v20 = vpack.c.bf16 %v590_v14, %v589_v8  ;;  %v475_v21 = vadd.f32 %v1423_v22, %v474_v17 }
  0xf5   : > { %v539_v23 = vadd.f32 %v1423_v22, %v538_v18  ;;  %v1118_v24 = vpop.f32.mrf.mxu0  ;;  %v1134_v25 = vpop.f32.mrf.mxu1  ;;  %v579_v28 = vmax.f32 %v483_v15, 0.0  ;;  %v595_v29 = vmax.f32 %v547_v16, 0.0 }
  0xf6   : > { %1071 = vst [vmem:[%s1438_s18 + $0x10] sm:$0xff] %v1003_v19   ;;  %1079 = vst [vmem:[%s1438_s18 + $0x50] sm:$0xff] %v1043_v20   ;;  %v486_v26 = vadd.f32 %v1118_v24, %v1423_v22  ;;  %v550_v27 = vadd.f32 %v1134_v25, %v1423_v22  ;;  %v577_v36 = vmax.f32 %v475_v21, 0.0 }
  0xf7   : > { %v477_v30 = vpop.f32.mrf.mxu0  ;;  %v541_v31 = vpop.f32.mrf.mxu1  ;;  %v593_v37 = vmax.f32 %v539_v23, 0.0 }
  0xf8   : > { %v580_v32 = vmax.f32 %v486_v26, 0.0  ;;  %v596_v33 = vmax.f32 %v550_v27, 0.0  ;;  %v478_v34 = vadd.f32 %v1423_v22, %v477_v30  ;;  %v542_v35 = vadd.f32 %v1423_v22, %v541_v31 }
  0xf9   : > { %v1121_v38 = vpop.f32.mrf.mxu0  ;;  %v1137_v39 = vpop.f32.mrf.mxu1 }
  0xfa   : > { %v1018_v40 = vpack.c.bf16 %v580_v32, %v579_v28  ;;  %v1058_v41 = vpack.c.bf16 %v596_v33, %v595_v29  ;;  %v578_v42 = vmax.f32 %v478_v34, 0.0  ;;  %v594_v43 = vmax.f32 %v542_v35, 0.0 }
  0xfb   : > { %v499_v44 = vadd.f32 %v1121_v38, %v1423_v22  ;;  %v563_v45 = vadd.f32 %v1137_v39, %v1423_v22  ;;  %v490_v46 = vpop.f32.mrf.mxu0  ;;  %v554_v47 = vpop.f32.mrf.mxu1 }
  0xfc   : > { %1074 = vst [vmem:[%s1438_s18 + $0x28] sm:$0xff] %v1018_v40   ;;  %1082 = vst [vmem:[%s1438_s18 + $0x68] sm:$0xff] %v1058_v41   ;;  %v1013_v48 = vpack.c.bf16 %v578_v42, %v577_v36  ;;  %v1053_v49 = vpack.c.bf16 %v594_v43, %v593_v37  ;;  %v491_v50 = vadd.f32 %v1423_v22, %v490_v46 }
  0xfd   : > { %v555_v51 = vadd.f32 %v1423_v22, %v554_v47  ;;  %v1122_v52 = vpop.f32.mrf.mxu0  ;;  %v1138_v53 = vpop.f32.mrf.mxu1  ;;  %v583_v56 = vmax.f32 %v499_v44, 0.0  ;;  %v599_v57 = vmax.f32 %v563_v45, 0.0 }
  0xfe   : > { %1073 = vst [vmem:[%s1438_s18 + $0x20] sm:$0xff] %v1013_v48   ;;  %1081 = vst [vmem:[%s1438_s18 + $0x60] sm:$0xff] %v1053_v49   ;;  %v502_v54 = vadd.f32 %v1122_v52, %v1423_v22  ;;  %v566_v55 = vadd.f32 %v1138_v53, %v1423_v22  ;;  %v581_v0 = vmax.f32 %v491_v50, 0.0 }
  0xff   : > { %v493_v58 = vpop.f32.mrf.mxu0  ;;  %v557_v59 = vpop.f32.mrf.mxu1  ;;  %v597_v1 = vmax.f32 %v555_v51, 0.0 }
 0x100   : > { %v584_v60 = vmax.f32 %v502_v54, 0.0  ;;  %v600_v61 = vmax.f32 %v566_v55, 0.0  ;;  %v494_v62 = vadd.f32 %v1423_v22, %v493_v58  ;;  %v558_v63 = vadd.f32 %v1423_v22, %v557_v59 }
 0x102   : > { %v1028_v2 = vpack.c.bf16 %v584_v60, %v583_v56  ;;  %v1068_v3 = vpack.c.bf16 %v600_v61, %v599_v57  ;;  %v582_v4 = vmax.f32 %v494_v62, 0.0  ;;  %v598_v5 = vmax.f32 %v558_v63, 0.0 }
 0x104   : > { %1076 = vst [vmem:[%s1438_s18 + $0x38] sm:$0xff] %v1028_v2   ;;  %1084 = vst [vmem:[%s1438_s18 + $0x78] sm:$0xff] %v1068_v3   ;;  %v1023_v22 = vpack.c.bf16 %v582_v4, %v581_v0  ;;  %v1063_v6 = vpack.c.bf16 %v598_v5, %v597_v1 }
 0x106   : > { %1075 = vst [vmem:[%s1438_s18 + $0x30] sm:$0xff] %v1023_v22   ;;  %1083 = vst [vmem:[%s1438_s18 + $0x70] sm:$0xff] %v1063_v6  }
 0x107   : > { %1232 = shalt.err (!%p1229_p5)
}
 0x108   : > { %s1233_s5 = scalar_lea.hbm %s1479_s27, 2048  ;;  %s1237_s8 = scalar_lea.hbm %s1537_s3, 4096 }
 0x109   : > { %p1234_p6 = scmp.ne.s32.totalorder %s1479_s27, %s1233_s5  ;;  %p1238_p10 = scmp.lt.s32.totalorder %s1479_s27, %s1537_s3 }
 0x10a   : > { %p1239_p11 = scmp.lt.s32.totalorder %s1237_s8, %s1233_s5 }
 0x10b   : > { %p1235_p7 = pnand %p1234_p6, %p1361_p4 }
 0x10c   : > { %p1240_p12 = por %p1239_p11, %p1238_p10 }
 0x10d   : > { %p1236_p9 = pneg %p1235_p7 }
 0x10f   : > { %p1241_p13 = pnand %p1240_p12, %p1236_p9 }
 0x111   : > { %1244 = shalt.err (!%p1241_p13)
}
 0x112   : > { %s1299_s11 = smov 64   ;;  %s1300_s18 = smov 4  }
 0x113   : > { %1143 = dma.vmem_to_hbm [thread:$0]  (%p1361_p4), %s1481_s21, 2048, %s1479_s27, %s1489_s15, %s1299_s11, %s1299_s11, %s1300_s18  }
 0x114 PF: > { %p1149_p0 = scmp.ge.s32.totalorder %s1295_s17, 2  ;;  %s791_s19 = sand.u32 1, %s1275_s12  }
 0x115   : > { %s792_s23 = scalar_lea.sflag [#allocation3], %s791_s19 }
 0x116   : > { %p1146_p1 = pnand %p1149_p0, %p1368_p8 }
 0x118   : > { %p1147_p2 = pneg %p1146_p1 }
 0x11a   : > { %1270 = dma.done.wait (%p1147_p2), %s792_s23, 2048  }
 0x11b   : > { %1272 = vsyncadd (%p1147_p2), %s792_s23, 4294965248  ;;  %s16_s17 = sadd.s32 1, %s1295_s17   ;;  %s1540_s12 = smov %s1279_s13 }
 0x11c   : > { %p13_p3 = scmp.ge.s32.totalorder %s16_s17, 4   ;;  %s1541_s13 = smov %s1283_s14 }
 0x11d   : > { %s1542_s14 = smov %s1374_s25  ;;  %s1543_s15 = smov %s1291_s16 }
 0x11e   : > { %s1544_s16 = smov %s1546_s20  ;;  %15 = sbr.rel (!%p13_p3) target bundleno = 4 (0x4), region = 73 }
 0x123   :  { %797 = vsyncpa [#allocation3], 1 }
 0x124   :  { %799 = vsyncpa [#allocation3 + $0x1], 1 }

</bundles_post_ra>
